<compile_context>
chip_gen: v5e
topology: v5e:2x2
jax: 0.10.0
libtpu: 0.0.40
codegen_flags: <defaults>
</compile_context>

<pallas_src>
import math

import jax
import jax.numpy as jnp
from jax import lax
from jax.experimental import pallas as pl
from jax.experimental.pallas import tpu as pltpu


def _round_up(x, m):
    return ((x + m - 1) // m) * m


def _proj_kernel(x_ref, w_ref, o_ref):
    # x_ref : (TR, D)   rows of the flattened (head*seq) axis for one
    #                   (group, batch, row-tile) grid point.
    # w_ref : (Dp, D)   per-group weight, output dim padded to a lane-dense
    #                   multiple of 128 (Dp); contracting dim (D) is last.
    # o_ref : (TR, Dp)  out = x @ w.T, f32 accumulation on the MXU.
    o_ref[...] = lax.dot_general(
        x_ref[...],
        w_ref[...],
        dimension_numbers=(((1,), (1,)), ((), ())),
        preferred_element_type=jnp.float32,
    ).astype(o_ref.dtype)


def _pick_row_tile(M, max_rows):
    # Full-extent block for small M (always layout-legal); otherwise a fixed
    # tile that is a multiple of 32 (covers f32/bf16/int8 sublane packing).
    if M <= max_rows:
        return M
    return max(max_rows - (max_rows % 32), 32)


def projection_forward(
    x,
    weight,
    seq_id=None,  # accepted per the module signature; unused by this projection
    *,
    compute_dtype=None,     # e.g. jnp.bfloat16 for production (f32 accumulate)
    max_rows=1024,          # row-tile cap; safe on v5e/v6e/v7x VMEM budgets
    pad_output_lanes=True,  # pad D2 to a multiple of 128 for unmasked stores
    use_pallas=None,        # None = auto (einsum fallback for tiny problems)
):
    """x: (*batch, G, H, S, D); weight: (G, D2, D1) applied as x @ weight[g].T."""
    orig_shape = x.shape
    *batch_dims, G, H, S, D = orig_shape
    assert weight.shape == (G, D, D)

    B = 1
    for b in batch_dims:
        B *= int(b)

    if compute_dtype is not None:
        x = x.astype(compute_dtype)
        weight = weight.astype(compute_dtype)

    M = H * S
    total_elems = B * G * M * D
    if use_pallas is None:
        use_pallas = total_elems >= (1 << 20)  # tiny problems: fused XLA einsum wins
    if not use_pallas:
        out = jnp.einsum("bghsd,gkd->bghsk", x.reshape(B, G, H, S, D), weight)
        return out.reshape(orig_shape)

    # Fold heads+seq into one big M axis (metadata-only reshape).
    xf = x.reshape(B, G, M, D)

    # Lane-dense output: pad the weight's output dim so the out tile's last
    # dim is a multiple of 128 (unmasked full-lane stores); slice back after.
    if pad_output_lanes and (D % 128 != 0):
        Dp = _round_up(D, 128)
        w_p = jnp.pad(weight, ((0, 0), (0, Dp - D), (0, 0)))
    else:
        Dp = D
        w_p = weight

    TR = _pick_row_tile(M, max_rows)
    n_row_tiles = pl.cdiv(M, TR)

    itemsize = jnp.dtype(xf.dtype).itemsize
    tile_bytes = (TR * D + TR * Dp + Dp * D) * itemsize
    vmem_limit = int(min(max(2 * tile_bytes + (8 << 20), 16 << 20), 64 << 20))

    cost = pl.CostEstimate(
        flops=2 * B * G * M * D * Dp,
        bytes_accessed=itemsize * (B * G * M * (D + Dp) + G * Dp * D),
        transcendentals=0,
    )

    out = pl.pallas_call(
        _proj_kernel,
        out_shape=jax.ShapeDtypeStruct((B, G, M, Dp), xf.dtype),
        # Grid ordered (G, B, rows): the per-group weight block index is
        # constant across all inner (B * rows) steps -> only G weight fetches.
        grid=(G, B, n_row_tiles),
        in_specs=[
            # x tile: TR rows of the flattened (head*seq) axis, full D lanes.
            pl.BlockSpec((None, None, TR, D), lambda g, b, r: (b, g, r, 0)),
            # weight tile: selected by group only.
            pl.BlockSpec((None, Dp, D), lambda g, b, r: (g, 0, 0)),
        ],
        out_specs=pl.BlockSpec((None, None, TR, Dp), lambda g, b, r: (b, g, r, 0)),
        compiler_params=pltpu.CompilerParams(
            dimension_semantics=("parallel", "parallel", "parallel"),
            vmem_limit_bytes=vmem_limit,
        ),
        cost_estimate=cost,
    )(xf, w_p)

    if Dp != D:
        out = out[..., :D]
    return out.reshape(orig_shape)


if __name__ == "__main__":
    # Small shapes consistent with the module's conventions.
    batch = 2
    num_heads = 4
    num_groups = 2
    proj_width = 32
    seq = 8
    hpg = num_heads // num_groups  # heads_per_group

    key = jax.random.PRNGKey(0)
    kx, kw, kx2 = jax.random.split(key, 3)

    x = jax.random.normal(
        kx, (batch, num_groups, hpg, seq, proj_width), dtype=jnp.float32
    )

    # Deterministic stand-in for nn.init.kaiming_uniform_(a=sqrt(5)) per group:
    # U(-1/sqrt(fan_in), 1/sqrt(fan_in)) with fan_in = proj_width.
    bound = 1.0 / math.sqrt(proj_width)
    weight = jax.random.uniform(
        kw,
        (num_groups, proj_width, proj_width),
        minval=-bound,
        maxval=bound,
        dtype=jnp.float32,
    )

    # seq_id with broadcastable shape (*batch, #group, #hpg, seq); unused here.
    seq_id = jnp.broadcast_to(
        jnp.arange(seq, dtype=jnp.int32), (batch, 1, 1, seq)
    )

    # 1) Demo shape; force the Pallas path (auto-select would pick einsum here).
    out = projection_forward(x, weight, seq_id, use_pallas=True)
    out = jax.block_until_ready(out)
    ref = jnp.einsum("bghsd,gkd->bghsk", x, weight)
    assert out.shape == x.shape
    assert jnp.allclose(out, ref, atol=1e-5, rtol=1e-5)

    # 2) Exercise the cdiv row tiling with a masked tail block (M % TR != 0).
    x2 = jax.random.normal(
        kx2, (1, num_groups, hpg, 40, proj_width), dtype=jnp.float32
    )
    out2 = projection_forward(x2, weight, None, use_pallas=True, max_rows=64)
    out2 = jax.block_until_ready(out2)
    ref2 = jnp.einsum("bghsd,gkd->bghsk", x2, weight)
    assert jnp.allclose(out2, ref2, atol=1e-5, rtol=1e-5)

    print("KERNEL_OK")
</pallas_src>

<mosaic_0001>
module attributes {stable_mosaic.version = 11 : i64} {
  func.func @_proj_kernel(%arg0: i32, %arg1: i32, %arg2: i32, %arg3: memref<1x1x16x32xf32, #tpu.memory_space<vmem>>, %arg4: memref<1x128x32xf32, #tpu.memory_space<vmem>>, %arg5: memref<1x1x16x128xf32, #tpu.memory_space<vmem>>) attributes {dimension_semantics = [#tpu.dimension_semantics<parallel>, #tpu.dimension_semantics<parallel>, #tpu.dimension_semantics<parallel>], iteration_bounds = array<i64: 2, 2, 1>, scalar_prefetch = 0 : i64, scratch_operands = 0 : i64, tpu.core_type = #tpu.core_type<tc>, window_params = [{transform_indices = @transform_0, window_bounds = array<i64: 1, 1, 16, 32>}, {transform_indices = @transform_1, window_bounds = array<i64: 1, 128, 32>}, {transform_indices = @transform_2, window_bounds = array<i64: 1, 1, 16, 128>}]} {
    %c0 = arith.constant 0 : index
    %c0_0 = arith.constant 0 : index
    %c0_1 = arith.constant 0 : index
    %c0_2 = arith.constant 0 : index
    %0 = vector.load %arg3[%c0, %c0_0, %c0_1, %c0_2] : memref<1x1x16x32xf32, #tpu.memory_space<vmem>>, vector<1x1x16x32xf32>
    %1 = vector.shape_cast %0 : vector<1x1x16x32xf32> to vector<16x32xf32>
    %c0_3 = arith.constant 0 : index
    %c0_4 = arith.constant 0 : index
    %c0_5 = arith.constant 0 : index
    %2 = vector.load %arg4[%c0_3, %c0_4, %c0_5] : memref<1x128x32xf32, #tpu.memory_space<vmem>>, vector<1x128x32xf32>
    %3 = vector.shape_cast %2 : vector<1x128x32xf32> to vector<128x32xf32>
    %cst = arith.constant dense<0.000000e+00> : vector<16x128xf32>
    %4 = tpu.matmul %1, %3, %cst {dimension_numbers = #tpu.dot_dimension_numbers<[1], [1], [0], [0], [0, 0, 1, 0], [], []>} : vector<16x32xf32>, vector<128x32xf32>, vector<16x128xf32> -> vector<16x128xf32>
    %c0_6 = arith.constant 0 : index
    %c0_7 = arith.constant 0 : index
    %c0_8 = arith.constant 0 : index
    %c0_9 = arith.constant 0 : index
    %5 = vector.load %arg5[%c0_6, %c0_7, %c0_8, %c0_9] : memref<1x1x16x128xf32, #tpu.memory_space<vmem>>, vector<1x1x16x128xf32>
    %6 = vector.shape_cast %5 : vector<1x1x16x128xf32> to vector<16x128xf32>
    %7 = vector.shape_cast %4 : vector<16x128xf32> to vector<1x1x16x128xf32>
    tpu.vector_store %arg5[%c0_6, %c0_7, %c0_8, %c0_9], %7 {strides = array<i32>} : memref<1x1x16x128xf32, #tpu.memory_space<vmem>>, vector<1x1x16x128xf32>,
    return
  }
  func.func @transform_0(%arg0: i32, %arg1: i32, %arg2: i32) -> (i32, i32, i32, i32) {
    %c0_i32 = arith.constant 0 : i32
    %c0_i32_0 = arith.constant 0 : i32
    return %arg1, %arg0, %arg2, %c0_i32 : i32, i32, i32, i32
  }
  func.func @transform_1(%arg0: i32, %arg1: i32, %arg2: i32) -> (i32, i32, i32) {
    %c0_i32 = arith.constant 0 : i32
    %c0_i32_0 = arith.constant 0 : i32
    %c0_i32_1 = arith.constant 0 : i32
    return %arg0, %c0_i32, %c0_i32_0 : i32, i32, i32
  }
  func.func @transform_2(%arg0: i32, %arg1: i32, %arg2: i32) -> (i32, i32, i32, i32) {
    %c0_i32 = arith.constant 0 : i32
    %c0_i32_0 = arith.constant 0 : i32
    return %arg1, %arg0, %arg2, %c0_i32 : i32, i32, i32, i32
  }
}

</mosaic_0001>

<bundles_post_ra>
// kernel: tpu_custom_call.1
= control target key start
LH: loop header
LB: loop body
LE: loop exit
PB: predicated region body
PF: predicated region fallthrough
CT: control target
= control target key end

     0   :  { %7 = vsyncpa [#allocation3], 0  ;;  %s858_s0 = inlined_call_operand.vmem [shape: f32[2,2,16,32], index: 0, kind: input, shape index: {}]   ;;  %s859_s1 = inlined_call_operand.vmem [shape: f32[2,128,32], index: 1, kind: input, shape index: {}]   ;;  %s860_s2 = inlined_call_operand.hbm [shape: f32[2,2,16,128], index: 2, kind: output, shape index: {}]  }
   0x1   :  { %9 = vsyncpa [#allocation3 + $0x1], 0  ;;  %s677_s9 = smov 0   ;;  %s679_s10 = smov 0  }
   0x2   :  { %s681_s11 = smov 0   ;;  %s683_s12 = smov 0  }
   0x3   :  { %s685_s13 = smov 0   ;;  %s687_s14 = smov 0  }
   0x4   :  { %s689_s15 = smov 0   ;;  %s691_s16 = smov 0  }
   0x5 LB: > { %s439_s17 = sadd.s32 4294967295, %s658_s16   ;;  %s440_s18 = sadd.s32 4294967294, %s658_s16   ;;  %s658_s16 = sphi %s691_s16, %s15_s16   ;;  %s654_s15 = sphi %s689_s15, %s869_s15   ;;  %s650_s14 = sphi %s687_s14, %s868_s14   ;;  %s646_s13 = sphi %s685_s13, %s867_s13   ;;  %s642_s12 = sphi %s683_s12, %s866_s12   ;;  %s638_s11 = sphi %s681_s11, %s865_s11   ;;  %s634_s10 = sphi %s679_s10, %s864_s10   ;;  %s630_s9 = sphi %s677_s9, %s863_s9  }
   0x6   : > { %s30_s19 = sadd.s32 1, %s650_s14  ;;  %s34_s20 = sadd.s32 1, %s654_s15 }
   0x7   : > { %p32_p0 = scmp.ge.s32.totalorder %s30_s19, 2  ;;  %p111_p1 = scmp.ne.s32.totalorder %s638_s11, %s634_s10 }
   0x8   : > { %p112_p2 = scmp.eq.s32.totalorder %s439_s17, 3  ;;  %p117_p5 = scmp.ne.s32.totalorder %s634_s10, %s630_s9 }
   0x9   : > { %s871_s19 = smov (%p32_p0, %s30_s19), 0  ;;  %s873_s20 = smov (!%p32_p0, %s34_s20), %s654_s15 }
   0xa   : > { %s94_s21 = ssub.s32 %s650_s14, %s871_s19  ;;  %p728_p3 = por %p112_p2, %p111_p1 }
   0xb   : > { %p36_p4 = scmp.ge.s32.totalorder %s873_s20, 2  ;;  %p118_p6 = scmp.eq.s32.totalorder %s440_s18, 3 }
   0xc   : > { %p443_p7 = scmp.ge.s32.totalorder %s658_s16, 1  ;;  %p161_p9 = scmp.lt.s32.totalorder %s658_s16, 5 }
   0xd   : > { %s875_s20 = smov (%p36_p4, %s873_s20), 0  ;;  %p737_p8 = por %p118_p6, %p117_p5 }
   0xe   : > { %s95_s24 = ssub.s32 %s654_s15, %s875_s20  ;;  %s101_s25 = sadd.s32 1, %s638_s11 }
   0xf   : > { %s96_s26 = sor.u32 %s95_s24, %s94_s21  ;;  %p162_p10 = pnand %p443_p7, %p161_p9 }
  0x10   : > { %p99_p11 = scmp.eq.s32.totalorder %s96_s26, 0  ;;  %p199_p12 = scmp.lt.s32.totalorder (!%p162_p10), %s646_s13, 1 }
  0x11   : > { %165 = sbr.rel (%p162_p10) target bundleno = 221 (0xdd), region = 28  ;;  %p197_p13 = scmp.lt.s32.totalorder (!%p162_p10), %s642_s12, 1 }
  0x12   : > { %s746_s27 = scalar_select %p99_p11, %s638_s11, %s101_s25  }
  0x13   : > { %s469_s25 = sshll.u32 (!%p162_p10), %s646_s13, 1  ;;  %s470_s26 = sshll.u32 (!%p162_p10), %s642_s12, 2 }
  0x16   : > { %s750_s28 = scalar_select %p199_p12, %s646_s13, 1  ;;  %vm234_vm0 = vcmask 261120  }
  0x17   : > { %s198_s5 = scalar_select %p197_p13, %s642_s12, 1 }
  0x18   : > { %s474_s29 = sshll.u32 %s750_s28, 7  ;;  %s445_s6 = sshll.u32 %s750_s28, 1 }
  0x19   : > { %s756_s4 = scalar_lea.vmem %s859_s1, %s474_s29  ;;  %s446_s7 = sshll.u32 %s198_s5, 2 }
  0x1a   : > { %v233_v0 = vld [vmem:[%s756_s4 + $0x78] sm:$0xff]  ;;  %v232_v1 = vld [vmem:[%s756_s4 + $0x70] sm:$0xff]  ;;  %v231_v2 = vld [vmem:[%s756_s4 + $0x68] sm:$0xff]  ;;  %s206_s8 = sadd.s32 %s446_s7, %s445_s6  ;;  %s193_s28 = sand.u32 1, %s634_s10  }
  0x1b   : > { %450 = vmatpush.xpose.msk.msra.mxu0 %vm234_vm0, %v233_v0  ;;  %475 = vmatpush.xpose.msk.msra.mxu1 %vm234_vm0, %v233_v0  ;;  %v230_v3 = vld [vmem:[%s756_s4 + $0x60] sm:$0xff]  ;;  %v229_v4 = vld [vmem:[%s756_s4 + $0x58] sm:$0xff]  ;;  %v228_v5 = vld [vmem:[%s756_s4 + $0x50] sm:$0xff]  ;;  %s447_s17 = sshll.u32 %s206_s8, 3  ;;  %s328_s29 = sadd.s32 %s470_s26, %s469_s25 }
  0x1c   : > { %v227_v6 = vld [vmem:[%s756_s4 + $0x48] sm:$0xff]  ;;  %v226_v7 = vld [vmem:[%s756_s4 + $0x40] sm:$0xff]  ;;  %v225_v8 = vld [vmem:[%s756_s4 + $0x38] sm:$0xff]  ;;  %s208_s24 = scalar_lea.vmem %s858_s0, %s447_s17  ;;  %s444_s30 = sshll.u32 %s193_s28, 4 }
  0x1d   : > { %v224_v9 = vld [vmem:[%s756_s4 + $0x30] sm:$0xff]  ;;  %v223_v10 = vld [vmem:[%s756_s4 + $0x28] sm:$0xff]  ;;  %v222_v11 = vld [vmem:[%s756_s4 + $0x20] sm:$0xff]  ;;  %s471_s3 = sshll.u32 %s328_s29, 3  ;;  %s195_s7 = scalar_lea.vmem [#allocation2], %s444_s30 }
  0x1e   : > { %v221_v12 = vld [vmem:[%s756_s4 + $0x18] sm:$0xff]  ;;  %v220_v13 = vld [vmem:[%s756_s4 + $0x10] sm:$0xff]  ;;  %v219_v14 = vld [vmem:[%s756_s4 + $0x8] sm:$0xff]  ;;  %s330_s6 = scalar_lea.hbm %s860_s2, %s471_s3  ;;  %s331_s8 = sshll.u32 %s195_s7, 4  ;;  %s332_s8 = int_to_ptr.vmem [resolvable:$true] %s331_s8 }
  0x1f   : > { %451 = vmatpush.xpose.msk.msra.mxu0 %vm234_vm0, %v232_v1  ;;  %476 = vmatpush.xpose.msk.msra.mxu1 %vm234_vm0, %v232_v1  ;;  %v218_v15 = vld [vmem:[%s756_s4] sm:$0xff]  ;;  %v217_v17 = vld [vmem:[%s208_s24 + $0x8] sm:$0xff]  ;;  %s333_s17 = sshll.u32 %s330_s6, 4  ;;  %s315_s13 = scalar_lea.sflag [#allocation3], %s193_s28  ;;  %s334_s17 = int_to_ptr.hbm [resolvable:$true] %s333_s17 }
  0x20   : > { %v216_v16 = vld [vmem:[%s208_s24] sm:$0xff]  ;;  %s578_s12 = sshra.s32 %s334_s17, 4  ;;  %s584_s25 = scalar_lea.hbm %s860_s2, 64  ;;  %s579_s12 = int_to_ptr.hbm [resolvable:$true] %s578_s12 }
  0x21   : > { %s580_s18 = scalar_lea.hbm %s579_s12, 16  ;;  %p585_p4 = scmp.lt.s32.totalorder %s579_s12, %s860_s2 }
  0x22   : > { %p581_p0 = scmp.ne.s32.totalorder %s579_s12, %s580_s18  ;;  %p586_p5 = scmp.lt.s32.totalorder %s584_s25, %s580_s18 }
  0x23   : > { %452 = vmatpush.xpose.msk.msra.mxu0 %vm234_vm0, %v231_v2  ;;  %477 = vmatpush.xpose.msk.msra.mxu1 %vm234_vm0, %v231_v2 }
  0x24   : > { %p582_p1 = pnand %p581_p0, %p728_p3  ;;  %p587_p6 = por %p586_p5, %p585_p4 }
  0x26   : > { %p583_p2 = pneg %p582_p1 }
  0x27   : > { %453 = vmatpush.xpose.msk.msra.mxu0 %vm234_vm0, %v230_v3  ;;  %478 = vmatpush.xpose.msk.msra.mxu1 %vm234_vm0, %v230_v3 }
  0x28   : > { %p588_p7 = pnand %p587_p6, %p583_p2 }
  0x2b   : > { %454 = vmatpush.xpose.msk.msra.mxu0 %vm234_vm0, %v229_v4  ;;  %479 = vmatpush.xpose.msk.msra.mxu1 %vm234_vm0, %v229_v4 }
  0x2f   : > { %455 = vmatpush.xpose.msk.msra.mxu0 %vm234_vm0, %v228_v5  ;;  %480 = vmatpush.xpose.msk.msra.mxu1 %vm234_vm0, %v228_v5 }
  0x33   : > { %456 = vmatpush.xpose.msk.msra.mxu0 %vm234_vm0, %v227_v6  ;;  %481 = vmatpush.xpose.msk.msra.mxu1 %vm234_vm0, %v227_v6 }
  0x37   : > { %457 = vmatpush.xpose.msk.msra.mxu0 %vm234_vm0, %v226_v7  ;;  %482 = vmatpush.xpose.msk.msra.mxu1 %vm234_vm0, %v226_v7 }
  0x3b   : > { %458 = vmatpush.xpose.msk.msra.mxu0 %vm234_vm0, %v225_v8  ;;  %483 = vmatpush.xpose.msk.msra.mxu1 %vm234_vm0, %v225_v8 }
  0x3f   : > { %459 = vmatpush.xpose.msk.msra.mxu0 %vm234_vm0, %v224_v9  ;;  %484 = vmatpush.xpose.msk.msra.mxu1 %vm234_vm0, %v224_v9 }
  0x43   : > { %460 = vmatpush.xpose.msk.msra.mxu0 %vm234_vm0, %v223_v10  ;;  %485 = vmatpush.xpose.msk.msra.mxu1 %vm234_vm0, %v223_v10 }
  0x47   : > { %461 = vmatpush.xpose.msk.msra.mxu0 %vm234_vm0, %v222_v11  ;;  %486 = vmatpush.xpose.msk.msra.mxu1 %vm234_vm0, %v222_v11 }
  0x4b   : > { %462 = vmatpush.xpose.msk.msra.mxu0 %vm234_vm0, %v221_v12  ;;  %487 = vmatpush.xpose.msk.msra.mxu1 %vm234_vm0, %v221_v12 }
  0x4f   : > { %463 = vmatpush.xpose.msk.msra.mxu0 %vm234_vm0, %v220_v13  ;;  %488 = vmatpush.xpose.msk.msra.mxu1 %vm234_vm0, %v220_v13 }
  0x53   : > { %464 = vmatpush.xpose.msk.msra.mxu0 %vm234_vm0, %v219_v14  ;;  %489 = vmatpush.xpose.msk.msra.mxu1 %vm234_vm0, %v219_v14 }
  0x57   : > { %465 = vmatpush.xpose.msk.msra.mxu0 %vm234_vm0, %v218_v15  ;;  %490 = vmatpush.xpose.msk.msra.mxu1 %vm234_vm0, %v218_v15 }
  0x5a   : > { %466 = vmatmul.msk.f32.vlgmr.msra.gmra.mxu0 %vm234_vm0, %v216_v16  ;;  %467 = vmatmul.msk.f32.vlgmr.msra.gmra.mxu1 %vm234_vm0, %v217_v17 }
  0xd7   : > { %v306_v18 = vpop.f32.mrf.mxu0  ;;  %v309_v19 = vpop.f32.mrf.mxu1 }
  0xd8   : > { %312 = vst [vmem:[%s195_s7] sm:$0xff] %v306_v18 }
  0xd9   : > { %313 = vst [vmem:[%s195_s7 + $0x8] sm:$0xff] %v309_v19 }
  0xda   : > { %591 = shalt.err (!%p588_p7)
}
  0xdb   : > { %s660_s28 = smov 128   ;;  %s661_s30 = smov 8  }
  0xdc   : > { %491 = dma.vmem_to_hbm [thread:$0]  (%p728_p3), %s332_s8, 256, %s334_s17, %s315_s13, %s660_s28, %s660_s28, %s661_s30  }
  0xdd PF: > { %p497_p9 = scmp.ge.s32.totalorder %s658_s16, 2  ;;  %s348_s3 = sand.u32 1, %s630_s9  }
  0xde   : > { %s349_s4 = scalar_lea.sflag [#allocation3], %s348_s3 }
  0xdf   : > { %p494_p10 = pnand %p497_p9, %p737_p8 }
  0xe1   : > { %p495_p11 = pneg %p494_p10 }
  0xe3   : > { %625 = dma.done.wait (%p495_p11), %s349_s4, 256  }
  0xe4   : > { %627 = vsyncadd (%p495_p11), %s349_s4, 4294967040  ;;  %s15_s16 = sadd.s32 1, %s658_s16   ;;  %s863_s9 = smov %s634_s10 }
  0xe5   : > { %p12_p12 = scmp.ge.s32.totalorder %s15_s16, 6   ;;  %s864_s10 = smov %s638_s11 }
  0xe6   : > { %s865_s11 = smov %s746_s27  ;;  %s866_s12 = smov %s650_s14 }
  0xe7   : > { %s867_s13 = smov %s654_s15  ;;  %s868_s14 = smov %s871_s19 }
  0xe8   : > { %s869_s15 = smov %s875_s20  ;;  %14 = sbr.rel (!%p12_p12) target bundleno = 5 (0x5), region = 66 }
  0xed   :  { %355 = vsyncpa [#allocation3], 1 }
  0xee   :  { %357 = vsyncpa [#allocation3 + $0x1], 1 }

</bundles_post_ra>
